<compile_context>
chip_gen: v7x
topology: tpu7x:2x2x1
jax: 0.10.0
libtpu: 0.0.40
codegen_flags: <defaults>
</compile_context>

<pallas_src>
import functools

import jax
import jax.numpy as jnp
from jax.experimental import pallas as pl
from jax.experimental.pallas import tpu as pltpu


def _log_sigmoid(x):
    # numerically stable logsigmoid(x) = min(x, 0) - log1p(exp(-|x|))
    return jnp.minimum(x, 0.0) - jnp.log1p(jnp.exp(-jnp.abs(x)))


def wo2vec_kernel(c_ref, wn_ref, out_ref, *, num_pos):
    c = c_ref[...]                          # (Bt, E)      f32
    wn = wn_ref[...]                        # (Bt, K, E)   f32, K = W + N

    # dots[b, k] = <wn[b, k, :], c[b, :]>
    # One sublane broadcast of c, one VPU multiply pass, one XLU lane reduce.
    # E is small here so the VPU + XLU path is fine; the kernel is HBM-bound
    # anyway, so the MXU would not help.
    dots = jnp.sum(wn * c[:, None, :], axis=-1)                       # (Bt, K)

    k_idx = jax.lax.broadcasted_iota(jnp.int32, dots.shape, 1)
    is_pos = k_idx < num_pos
    # positives use +<w, c>; negatives use <n, -c> = -<n, c>
    signed = jnp.where(is_pos, dots, -dots)

    ls = _log_sigmoid(signed)                                         # one EUP pass
    zero = jnp.zeros_like(ls)
    lp = jnp.sum(jnp.where(is_pos, ls, zero), axis=1, keepdims=True)  # (Bt, 1)
    ln = jnp.sum(jnp.where(is_pos, zero, ls), axis=1, keepdims=True)  # (Bt, 1)
    out_ref[...] = jnp.concatenate([lp, ln], axis=1)                  # (Bt, 2)


def _choose_batch_tile(batch, k, embed):
    """Largest power-of-two batch tile whose double-buffered, lane-padded VMEM
    footprint stays under ~12 MiB (safe under v5e's 16 MiB default scoped VMEM
    and well inside v6e/v7x), while amortising per-grid-step overhead."""
    padded_e = pl.cdiv(embed, 128) * 128              # E pads to 128 lanes in VMEM
    row_vmem = 2 * (k + 1) * padded_e * 4             # x2: Pallas double-buffers inputs
    vmem_budget = 12 * 1024 * 1024
    max_rows = max(8, vmem_budget // max(row_vmem, 1))
    for bt in (1024, 512, 256, 128):
        if bt <= max_rows and batch >= bt:
            return bt
    return batch                                      # small batch: single block


def wo2vec_forward(in_emb, out_emb, centor_word, window_word, neg_word):
    """Embedding gathers in plain JAX (one fused gather for window+neg); the hot
    path (dots, logsigmoid, reductions) runs in a batch-tiled Pallas kernel."""
    B = centor_word.shape[0]
    W = window_word.shape[1]
    N = neg_word.shape[1]
    E = in_emb.shape[1]
    K = W + N

    # Single gather for window + negative rows (concatenating indices is free;
    # concatenating gathered embeddings would add an extra (B,K,E) HBM copy).
    wn_idx = jnp.concatenate([window_word, neg_word], axis=1)         # (B, K)

    bt = _choose_batch_tile(B, K, E)
    num_tiles = pl.cdiv(B, bt)
    b_pad = num_tiles * bt
    if b_pad != B:
        centor_word = jnp.pad(centor_word, (0, b_pad - B))
        wn_idx = jnp.pad(wn_idx, ((0, b_pad - B), (0, 0)))

    # Embedding row gathers stay in XLA (fast fused gather); the kernel streams
    # the gathered slabs through double-buffered BlockSpec DMAs.
    # TODO(synk): fuse the gathers into the kernel (scalar-prefetched indices +
    # manual HBM row DMAs) only if a bulk-gather DMA path is available; per-row
    # ~E*4-byte DMAs would be slower than XLA's gather.
    c_emb = jnp.take(in_emb, centor_word, axis=0)                     # (b_pad, E)
    wn_emb = jnp.take(out_emb, wn_idx, axis=0)                        # (b_pad, K, E)

    cost = pl.CostEstimate(
        flops=2 * b_pad * K * E,
        transcendentals=2 * b_pad * K,
        bytes_accessed=4 * b_pad * ((K + 1) * E + 2),
    )

    out = pl.pallas_call(
        functools.partial(wo2vec_kernel, num_pos=W),
        out_shape=jax.ShapeDtypeStruct((b_pad, 2), jnp.float32),
        grid_spec=pltpu.PrefetchScalarGridSpec(
            num_scalar_prefetch=0,
            grid=(num_tiles,),
            in_specs=[
                pl.BlockSpec((bt, E), lambda i: (i, 0)),
                pl.BlockSpec((bt, K, E), lambda i: (i, 0, 0)),
            ],
            out_specs=pl.BlockSpec((bt, 2), lambda i: (i, 0)),
        ),
        compiler_params=pltpu.CompilerParams(
            dimension_semantics=("parallel",),
        ),
        cost_estimate=cost,
    )(c_emb, wn_emb)

    log_pos = out[:B, 0]                                              # (B,)
    log_neg = out[:B, 1]                                              # (B,)

    # Reproduce the PyTorch module exactly: `neg_dot.squeeze(2)` is never
    # reassigned, so log_neg is effectively (B, 1) and `log_pos + log_neg`
    # broadcasts to (B, B):  loss[i, j] = -(log_pos[j] + log_neg[i]).
    return -(log_pos[None, :] + log_neg[:, None])


if __name__ == "__main__":
    # Small, module-consistent shapes.
    vocab_size = 64
    embed_size = 32
    B = 4          # batch
    W = 8          # window words per center word
    N = 8          # negative samples per center word

    key = jax.random.PRNGKey(0)
    k_in, k_out, k_c, k_w, k_n = jax.random.split(key, 5)

    # Deterministic "nn.Embedding" weights (synthetic, no checkpoint load).
    in_emb = jax.random.normal(k_in, (vocab_size, embed_size), dtype=jnp.float32)
    out_emb = jax.random.normal(k_out, (vocab_size, embed_size), dtype=jnp.float32)

    centor_word = jax.random.randint(k_c, (B,), 0, vocab_size, dtype=jnp.int32)
    window_word = jax.random.randint(k_w, (B, W), 0, vocab_size, dtype=jnp.int32)
    neg_word = jax.random.randint(k_n, (B, N), 0, vocab_size, dtype=jnp.int32)

    loss = wo2vec_forward(in_emb, out_emb, centor_word, window_word, neg_word)
    jax.block_until_ready(loss)

    # Pure-JAX reference (same PyTorch broadcast quirk) for a sanity check.
    c = in_emb[centor_word]
    w = out_emb[window_word]
    n = out_emb[neg_word]
    pos = jnp.sum(w * c[:, None, :], axis=-1)
    neg = jnp.sum(n * (-c)[:, None, :], axis=-1)
    lp_r = jnp.sum(jax.nn.log_sigmoid(pos), axis=1)
    ln_r = jnp.sum(jax.nn.log_sigmoid(neg), axis=1)
    ref = -(lp_r[None, :] + ln_r[:, None])

    assert loss.shape == (B, B)
    assert jnp.allclose(loss, ref, atol=1e-4, rtol=1e-4)

    print("KERNEL_OK")
</pallas_src>

<mosaic_0001>
module attributes {stable_mosaic.version = 11 : i64} {
  func.func @wo2vec_kernel(%arg0: i32, %arg1: memref<4x32xf32, #tpu.memory_space<vmem>>, %arg2: memref<4x16x32xf32, #tpu.memory_space<vmem>>, %arg3: memref<4x2xf32, #tpu.memory_space<vmem>>) attributes {dimension_semantics = [#tpu.dimension_semantics<parallel>], iteration_bounds = array<i64: 1>, scalar_prefetch = 0 : i64, scratch_operands = 0 : i64, tpu.core_type = #tpu.core_type<tc>, window_params = [{transform_indices = @transform_0, window_bounds = array<i64: 4, 32>}, {transform_indices = @transform_1, window_bounds = array<i64: 4, 16, 32>}, {transform_indices = @transform_2, window_bounds = array<i64: 4, 2>}]} {
    %c0 = arith.constant 0 : index
    %c0_0 = arith.constant 0 : index
    %0 = vector.load %arg1[%c0, %c0_0] : memref<4x32xf32, #tpu.memory_space<vmem>>, vector<4x32xf32>
    %c0_1 = arith.constant 0 : index
    %c0_2 = arith.constant 0 : index
    %c0_3 = arith.constant 0 : index
    %1 = vector.load %arg2[%c0_1, %c0_2, %c0_3] : memref<4x16x32xf32, #tpu.memory_space<vmem>>, vector<4x16x32xf32>
    %2 = vector.shape_cast %0 : vector<4x32xf32> to vector<4x1x32xf32>
    %3 = vector.broadcast %2 : vector<4x1x32xf32> to vector<4x16x32xf32>
    %4 = arith.mulf %1, %3 : vector<4x16x32xf32>
    %cst = arith.constant dense<0.000000e+00> : vector<4x16xf32>
    %5 = vector.multi_reduction <add>, %4, %cst [2] : vector<4x16x32xf32> to vector<4x16xf32>
    %6 = tpu.iota {dimensions = array<i32: 1>} : vector<4x16xi32>
    %c8_i32 = arith.constant 8 : i32
    %7 = vector.broadcast %c8_i32 : i32 to vector<4x16xi32>
    %8 = arith.cmpi slt, %6, %7 : vector<4x16xi32>
    %cst_4 = arith.constant 0.000000e+00 : f32
    %9 = vector.broadcast %cst_4 : f32 to vector<4x16xf32>
    %10 = arith.subf %9, %5 : vector<4x16xf32>
    %11 = arith.select %8, %5, %10 : vector<4x16xi1>, vector<4x16xf32>
    %cst_5 = arith.constant 0.000000e+00 : f32
    %12 = vector.broadcast %cst_5 : f32 to vector<4x16xf32>
    %13 = arith.minimumf %11, %12 : vector<4x16xf32>
    %14 = math.absf %11 : vector<4x16xf32>
    %cst_6 = arith.constant 0.000000e+00 : f32
    %15 = vector.broadcast %cst_6 : f32 to vector<4x16xf32>
    %16 = arith.subf %15, %14 : vector<4x16xf32>
    %17 = math.exp %16 : vector<4x16xf32>
    %18 = math.log1p %17 : vector<4x16xf32>
    %19 = arith.subf %13, %18 : vector<4x16xf32>
    %cst_7 = arith.constant 0.000000e+00 : f32
    %20 = vector.broadcast %cst_7 : f32 to vector<4x16xf32>
    %21 = arith.select %8, %19, %20 : vector<4x16xi1>, vector<4x16xf32>
    %cst_8 = arith.constant dense<0.000000e+00> : vector<4xf32>
    %22 = vector.multi_reduction <add>, %21, %cst_8 [1] : vector<4x16xf32> to vector<4xf32>
    %23 = vector.shape_cast %22 : vector<4xf32> to vector<4x1xf32>
    %24 = arith.select %8, %20, %19 : vector<4x16xi1>, vector<4x16xf32>
    %cst_9 = arith.constant dense<0.000000e+00> : vector<4xf32>
    %25 = vector.multi_reduction <add>, %24, %cst_9 [1] : vector<4x16xf32> to vector<4xf32>
    %26 = vector.shape_cast %25 : vector<4xf32> to vector<4x1xf32>
    %27 = tpu.concatenate %23, %26 in 1 : vector<4x1xf32>, vector<4x1xf32> -> vector<4x2xf32>
    %c0_10 = arith.constant 0 : index
    %c0_11 = arith.constant 0 : index
    %28 = vector.load %arg3[%c0_10, %c0_11] : memref<4x2xf32, #tpu.memory_space<vmem>>, vector<4x2xf32>
    tpu.vector_store %arg3[%c0_10, %c0_11], %27 {strides = array<i32>} : memref<4x2xf32, #tpu.memory_space<vmem>>, vector<4x2xf32>,
    return
  }
  func.func @transform_0(%arg0: i32) -> (i32, i32) {
    %c0_i32 = arith.constant 0 : i32
    %c0_i32_0 = arith.constant 0 : i32
    return %arg0, %c0_i32 : i32, i32
  }
  func.func @transform_1(%arg0: i32) -> (i32, i32, i32) {
    %c0_i32 = arith.constant 0 : i32
    %c0_i32_0 = arith.constant 0 : i32
    %c0_i32_1 = arith.constant 0 : i32
    return %arg0, %c0_i32, %c0_i32_0 : i32, i32, i32
  }
  func.func @transform_2(%arg0: i32) -> (i32, i32) {
    %c0_i32 = arith.constant 0 : i32
    %c0_i32_0 = arith.constant 0 : i32
    return %arg0, %c0_i32 : i32, i32
  }
}

</mosaic_0001>

<bundles_post_ra>
// kernel: tpu_custom_call.1
= control target key start
LH: loop header
LB: loop body
LE: loop exit
PB: predicated region body
PF: predicated region fallthrough
CT: control target
= control target key end

     0   :  { %7 = vsyncpa [#allocation3], 0  ;;  %s424_s0 = inlined_call_operand.hbm [shape: f32[4,32], index: 0, kind: input, shape index: {}]   ;;  %s425_s1 = inlined_call_operand.hbm [shape: f32[4,16,32], index: 1, kind: input, shape index: {}]   ;;  %s426_s2 = inlined_call_operand.vmem [shape: f32[4,2], index: 2, kind: output, shape index: {}]  }
   0x1   :  { %8 = vsyncpa [#allocation5], 0  ;;  %s329_s9 = smov [#allocation2]   ;;  %s330_s11 = smov [#allocation4]  }
   0x2   :  { %s15_s10 = sshll.u32 %s329_s9, 4  ;;  %s24_s12 = sshll.u32 %s330_s11, 4  ;;  %s16_s10 = int_to_ptr.vmem [resolvable:$true] %s15_s10  ;;  %s349_s12 = int_to_ptr.vmem [resolvable:$true] %s24_s12 }
   0x3   :  { %s281_s15 = scalar_lea.hbm %s424_s0, 64 }
   0x4   :  { %p282_p0 = scmp.ne.s32.totalorder %s424_s0, %s281_s15  ;;  %p285_p1 = scmp.lt.u32.totalorder %s281_s15, %s424_s0 }
   0x6   :  { %p287_p2 = pnand %p285_p1, %p282_p0 }
   0x8   :  { %290 = shalt.err (!%p287_p2)
}
   0x9   :  { %s291_s20 = scalar_lea.vmem %s16_s10, 64  ;;  %p296_p4 = scmp.lt.s32.totalorder %s16_s10, %s16_s10 }
   0xa   :  { %p292_p3 = scmp.ne.s32.totalorder %s16_s10, %s291_s20  ;;  %p297_p5 = scmp.lt.s32.totalorder %s291_s20, %s291_s20 }
   0xc   :  { %p298_p6 = por %p297_p5, %p296_p4 }
   0xe   :  { %p299_p7 = pnand %p298_p6, %p292_p3 }
  0x10   :  { %302 = shalt.err (!%p299_p7)
}
  0x11   :  { %18 = dma.hbm_to_vmem [thread:$0]  %s424_s0, 64, %s16_s10, [#allocation3]  }
  0x12   :  { %s303_s25 = scalar_lea.hbm %s425_s1, 1024 }
  0x13   :  { %p304_p8 = scmp.ne.s32.totalorder %s425_s1, %s303_s25  ;;  %p307_p9 = scmp.lt.u32.totalorder %s303_s25, %s425_s1 }
  0x15   :  { %p309_p10 = pnand %p307_p9, %p304_p8 }
  0x17   :  { %312 = shalt.err (!%p309_p10)
}
  0x18   :  { %s313_s30 = scalar_lea.vmem %s349_s12, 1024  ;;  %p318_p12 = scmp.lt.s32.totalorder %s349_s12, %s349_s12 }
  0x19   :  { %p314_p11 = scmp.ne.s32.totalorder %s349_s12, %s313_s30  ;;  %p319_p13 = scmp.lt.s32.totalorder %s313_s30, %s313_s30 }
  0x1b   :  { %p320_p0 = por %p319_p13, %p318_p12 }
  0x1d   :  { %p321_p1 = pnand %p320_p0, %p314_p11 }
  0x1f   :  { %324 = shalt.err (!%p321_p1)
}
  0x20   :  { %s331_s0 = smov 128   ;;  %s332_s3 = smov 8  }
  0x21   :  { %30 = dma.hbm_to_vmem [thread:$0]  %s425_s1, 1024, %s349_s12, [#allocation5], %s331_s0, %s331_s0, %s332_s3  }
  0x22   :  { %325 = dma.done.wait [#allocation3], 64  }
  0x23   :  { %326 = vsyncadd [#allocation3], 4294967232 }
  0x24   :  { %327 = dma.done.wait [#allocation5], 1024  }
  0x25   :  { %328 = vsyncadd [#allocation5], 4294966272  ;;  %v58_v0 = vlaneseq  ;;  %v333_v1 = vmov 1966171168   ;;  %v38_v12 = vld [vmem:[#allocation4] sm:$0xff]  ;;  %v39_v13 = vld [vmem:[#allocation4 + $0x8] sm:$0xff] }
  0x26   :  { %v56_v2 = vunpack.c.l.s4 %v333_v1  ;;  %v271_v9 = vld.sshfl [vmem:[#allocation2] sm:$0x33 pattern:$0x75316420]  ;;  %vm99_vm0 = vcmask 261120   ;;  %v40_v17 = vld [vmem:[#allocation4 + $0x10] sm:$0xff] }
  0x27   :  { %v59_v3 = vshrl.u32 %v58_v0, 7  ;;  %v380_v4 = vand.u32 127, %v58_v0  ;;  %v54_v11 = vcombine.high %v271_v9, %v271_v9  ;;  %v41_v18 = vld [vmem:[#allocation4 + $0x18] sm:$0xff]  ;;  %v42_v23 = vld [vmem:[#allocation4 + $0x20] sm:$0xff]  ;;  %v43_v28 = vld [vmem:[#allocation4 + $0x28] sm:$0xff]  ;;  %vm152_vm1 = vcmask 130112  }
  0x28   :  { %v57_v5 = vunpack.c.0.s8 %v56_v2  ;;  %v44_v33 = vld [vmem:[#allocation4 + $0x30] sm:$0xff]  ;;  %v45_v36 = vld [vmem:[#allocation4 + $0x38] sm:$0xff]  ;;  %vm181_vm2 = vcmask 1041409   ;;  %vm183_vm3 = vcmask 1042434   ;;  %vm185_vm4 = vcmask 1043459  }
  0x29   :  { %v383_v6 = vsub.s32 %v380_v4, %v59_v3  ;;  %v73_v8 = vsub.s32 0, %v59_v3  ;;  %v147_v43 = vadd.s32 4294967288, %v380_v4  ;;  %vm126_vm5 = vcmp.lt.s32.totalorder %v380_v4, 8 }
  0x2a   :  { %v60_v7 = vsub.s32 %v57_v5, %v59_v3  ;;  %vm253_vm7 = vcmask 125952   ;;  %vm261_vm8 = vcmask 7168   ;;  %vm263_vm9 = vcmask 11264  }
  0x2b   :  { %v150_v44 = vsub.s32 %v147_v43, %v59_v3 }
  0x2c   :  { %v61_v10 = vrot.slane %v271_v9, %v60_v7  ;;  %v68_v15 = vrot.slane %v54_v11, %v60_v7 }
  0x2e   :  { %v74_v14 = vrot.slane %v61_v10, %v73_v8  ;;  %v69_v16 = vcombine.high %v61_v10, %v61_v10  ;;  %v78_v20 = vrot.slane %v68_v15, %v73_v8  ;;  %v70_v24 = vcombine.high %v68_v15, %v68_v15 }
  0x30   :  { %v91_v19 = vmul.f32 %v74_v14, %v38_v12  ;;  %v92_v21 = vmul.f32 %v74_v14, %v39_v13  ;;  %v82_v22 = vrot.slane %v69_v16, %v73_v8  ;;  %v93_v26 = vmul.f32 %v78_v20, %v40_v17 }
  0x31   :  { %v94_v27 = vmul.f32 %v78_v20, %v41_v18  ;;  %v86_v32 = vrot.slane %v70_v24, %v73_v8 }
  0x32   :  { %v100_v25 = vsel %vm99_vm0, %v91_v19, 0.0  ;;  %v106_v29 = vsel %vm99_vm0, %v93_v26, 0.0  ;;  %v103_v30 = vsel %vm99_vm0, %v92_v21, 0.0  ;;  %v95_v31 = vmul.f32 %v82_v22, %v42_v23 }
  0x33   :  { %101 = vadd.xlane.f32.xlu0 %v100_v25  ;;  %107 = vadd.xlane.f32.xlu1 %v106_v29  ;;  %v109_v34 = vsel %vm99_vm0, %v94_v27, 0.0  ;;  %v96_v35 = vmul.f32 %v82_v22, %v43_v28  ;;  %v97_v38 = vmul.f32 %v86_v32, %v44_v33  ;;  %v98_v40 = vmul.f32 %v86_v32, %v45_v36 }
  0x34   :  { %v112_v37 = vsel %vm99_vm0, %v95_v31, 0.0 }
  0x35   :  { %v115_v39 = vsel %vm99_vm0, %v96_v35, 0.0  ;;  %v118_v41 = vsel %vm99_vm0, %v97_v38, 0.0  ;;  %v121_v42 = vsel %vm99_vm0, %v98_v40, 0.0 }
  0x37   :  { %104 = vadd.xlane.f32.xlu0 %v103_v30  ;;  %110 = vadd.xlane.f32.xlu1 %v109_v34 }
  0x3b   :  { %113 = vadd.xlane.f32.xlu0 %v112_v37  ;;  %116 = vadd.xlane.f32.xlu1 %v115_v39 }
  0x3f   :  { %119 = vadd.xlane.f32.xlu0 %v118_v41  ;;  %122 = vadd.xlane.f32.xlu1 %v121_v42 }
  0xc0   :  { %v102_v45 = vpop.xlane.xlu0 %101  ;;  %v108_v47 = vpop.xlane.xlu1 %107 }
  0xc1   :  { %v127_v46 = vsub.f32 0.0, %v102_v45  ;;  %v129_v48 = vsub.f32 0.0, %v108_v47  ;;  %v146_v50 = vrot.slane %v102_v45, %v383_v6  ;;  %v157_v54 = vrot.slane %v108_v47, %v383_v6 }
  0xc3   :  { %v199_v53 = vrot.slane %v127_v46, %v383_v6  ;;  %v208_v60 = vrot.slane %v129_v48, %v383_v6 }
  0xc4   :  { %v105_v49 = vpop.xlane.xlu0 %104  ;;  %v111_v55 = vpop.xlane.xlu1 %110 }
  0xc5   :  { %v128_v51 = vsub.f32 0.0, %v105_v49  ;;  %v151_v52 = vrot.slane %v105_v49, %v150_v44  ;;  %v130_v58 = vsub.f32 0.0, %v111_v55  ;;  %v161_v59 = vrot.slane %v111_v55, %v150_v44 }
  0xc7   :  { %v153_v56 = vsel %vm152_vm1, %v151_v52, %v146_v50  ;;  %v203_v57 = vrot.slane %v128_v51, %v150_v44  ;;  %v162_v63 = vsel %vm152_vm1, %v161_v59, %v157_v54  ;;  %v212_v0 = vrot.slane %v130_v58, %v150_v44 }
  0xc8   :  { %v114_v61 = vpop.xlane.xlu0 %113  ;;  %v182_v2 = vsel %vm181_vm2, %v162_v63, %v153_v56  ;;  %v117_v5 = vpop.xlane.xlu1 %116 }
  0xc9   :  { %v204_v62 = vsel %vm152_vm1, %v203_v57, %v199_v53  ;;  %v131_v1 = vsub.f32 0.0, %v114_v61  ;;  %v166_v3 = vrot.slane %v114_v61, %v383_v6  ;;  %v213_v7 = vsel %vm152_vm1, %v212_v0, %v208_v60 }
  0xca   :  { %v132_v9 = vsub.f32 0.0, %v117_v5  ;;  %v170_v10 = vrot.slane %v117_v5, %v150_v44  ;;  %v232_v11 = vsel %vm181_vm2, %v213_v7, %v204_v62 }
  0xcb   :  { %v217_v8 = vrot.slane %v131_v1, %v383_v6 }
  0xcc   :  { %v120_v12 = vpop.xlane.xlu0 %119  ;;  %v171_v13 = vsel %vm152_vm1, %v170_v10, %v166_v3  ;;  %v221_v14 = vrot.slane %v132_v9, %v150_v44  ;;  %v123_v18 = vpop.xlane.xlu1 %122 }
  0xcd   :  { %v133_v15 = vsub.f32 0.0, %v120_v12  ;;  %v175_v16 = vrot.slane %v120_v12, %v383_v6  ;;  %v184_v17 = vsel %vm183_vm3, %v171_v13, %v182_v2  ;;  %v134_v20 = vsub.f32 0.0, %v123_v18 }
  0xce   :  { %v222_v19 = vsel %vm152_vm1, %v221_v14, %v217_v8  ;;  %v179_v21 = vrot.slane %v123_v18, %v150_v44 }
  0xcf   :  { %v226_v22 = vrot.slane %v133_v15, %v383_v6  ;;  %v233_v23 = vsel %vm183_vm3, %v222_v19, %v232_v11  ;;  %v230_v24 = vrot.slane %v134_v20, %v150_v44 }
  0xd0   :  { %v180_v25 = vsel %vm152_vm1, %v179_v21, %v175_v16 }
  0xd1   :  { %v186_v26 = vsel %vm185_vm4, %v180_v25, %v184_v17  ;;  %v231_v27 = vsel %vm152_vm1, %v230_v24, %v226_v22 }
  0xd2   :  { %v234_v28 = vsel %vm185_vm4, %v231_v27, %v233_v23 }
  0xd3   :  { %v236_v29 = vsel %vm126_vm5, %v186_v26, %v234_v28 }
  0xd4   :  { %v238_v30 = vand.u32 2147483647, %v236_v29  ;;  %v237_v40 = vmin.f32 %v236_v29, 0.0 }
  0xd6   :  { %v239_v31 = vsub.f32 0.0, %v238_v30 }
  0xd8   :  { %v240_v32 = vmul.f32 1.442695, %v239_v31 }
  0xda   :  { %277 = vpow2.f32 %v240_v32 }
  0xe4   :  { %v278_v33 = vpop.eup %277 }
  0xe5   :  { %v242_v6 = vadd.f32 1.0, %v278_v33  ;;  %v245_v34 = vmul.f32 -0.5, %v278_v33  ;;  %v248_v36 = vand.u32 2147483647, %v278_v33 }
  0xe7   :  { %279 = vlog2.f32 %v242_v6  ;;  %v246_v35 = vadd.f32 1.0, %v245_v34  ;;  %vm249_vm6 = vcmp.lt.f32.partialorder %v248_v36, 0.0004427343 }
  0xe9   :  { %v247_v39 = vmul.f32 %v278_v33, %v246_v35 }
  0xf1   :  { %v280_v37 = vpop.eup %279 }
  0xf2   :  { %v244_v38 = vmul.f32 0.6931472, %v280_v37 }
  0xf4   :  { %v250_v41 = vsel %vm249_vm6, %v247_v39, %v244_v38 }
  0xf5   :  { %v251_v42 = vsub.f32 %v237_v40, %v250_v41 }
  0xf7   :  { %v257_v43 = vsel %vm126_vm5, 0.0, %v251_v42  ;;  %v252_v44 = vsel %vm126_vm5, %v251_v42, 0.0 }
  0xf8   :  { %v258_v45 = vsel %vm253_vm7, %v257_v43, 0.0  ;;  %v254_v46 = vsel %vm253_vm7, %v252_v44, 0.0 }
  0xf9   :  { %259 = vadd.xlane.f32.xlu1 %v258_v45  ;;  %255 = vadd.xlane.f32.xlu0 %v254_v46 }
 0x186   :  { %v260_v47 = vpop.xlane.xlu1 %259  ;;  %v256_v48 = vpop.xlane.xlu0 %255 }
 0x187   :  { %v262_v49 = vsel %vm261_vm8, %v256_v48, %v260_v47 }
 0x188   :  { %264 = vst.msk [vmem:[%s426_s2] sm:$0xf] %vm263_vm9, %v262_v49 }
 0x189   :  { %269 = vsyncpa [#allocation3], 1 }
 0x18a   :  { %270 = vsyncpa [#allocation5], 1 }

</bundles_post_ra>
